<compile_context>
chip_gen: v6e
topology: v6e:2x2x1
jax: 0.10.0
libtpu: 0.0.40
codegen_flags: <defaults>
</compile_context>

<pallas_src>
import jax
import jax.numpy as jnp
from jax.experimental import pallas as pl
from jax.experimental.pallas import tpu as pltpu

NUM = 256  # hidden width, matches `num = 256` in the PyTorch module


def _softplus(z):
    # Matches torch.nn.functional.softplus(beta=1, threshold=20):
    # returns z for z > 20, else log(1 + exp(z)).
    return jnp.where(z > 20.0, z, jnp.log1p(jnp.exp(jnp.minimum(z, 20.0))))


def multipler_net_kernel(x_ref, w1_ref, b1_ref, w2_ref, b2_ref, w3_ref, b3_ref,
                         o_ref):
    # x_ref: (TM, state_dim) f32, batch on sublanes; cast to bf16 in-kernel.
    x = x_ref[...].astype(jnp.bfloat16)

    # l1 + ReLU  (MXU, bf16 inputs, f32 accumulate); w1 is (state_dim, NUM).
    h1 = jnp.dot(x, w1_ref[...], preferred_element_type=jnp.float32)
    h1 = jnp.maximum(h1 + b1_ref[...], 0.0)                    # (TM, NUM) f32

    # l2 + ReLU; w2 is (NUM, NUM) stored (in, out).
    h2 = jnp.dot(h1.astype(jnp.bfloat16), w2_ref[...],
                 preferred_element_type=jnp.float32)
    h2 = jnp.maximum(h2 + b2_ref[...], 0.0)                    # (TM, NUM) f32

    # l3 + Softplus: output width is 1, so keep it off the MXU — VPU multiply
    # with the (1, NUM) weight row + lane (XLU) reduction -> (TM, 1).
    z = jnp.sum(h2 * w3_ref[...], axis=-1, keepdims=True) + b3_ref[0, 0]
    o_ref[...] = _softplus(z)


def _round_up(x, m):
    return ((x + m - 1) // m) * m


def multipler_net_forward(state, params, *, batch_tile=4096):
    """state: (B, state_dim) float32. Returns (B, 1) float32.

    One pallas_call, no wrapper-side data movement.  Batch is tiled over a 1-D
    "parallel" grid; weights stay VMEM-resident via constant index maps.
    """
    w1, b1, w2, b2, w3, b3 = params
    B, state_dim = state.shape
    state = state.astype(jnp.float32)

    # Batch lives on the sublane axis -> tile only needs to be a multiple of 8.
    tm = max(8, min(_round_up(batch_tile, 8), _round_up(B, 8)))
    grid = (pl.cdiv(B, tm),)          # ragged trailing block; OOB rows discarded
    const = lambda i: (0, 0)          # weights/biases: resident across steps

    flops = 2 * B * (state_dim * NUM + NUM * NUM + NUM)
    bytes_accessed = (B * state_dim * 4 + B * 4
                      + (state_dim * NUM + NUM * NUM) * 2 + (3 * NUM + 1) * 4)
    cost = pl.CostEstimate(flops=flops, transcendentals=2 * B,
                           bytes_accessed=bytes_accessed)

    out = pl.pallas_call(
        multipler_net_kernel,
        grid=grid,
        in_specs=[
            pl.BlockSpec((tm, state_dim), lambda i: (i, 0)),        # x (f32)
            pl.BlockSpec((state_dim, NUM), const),                  # w1 (bf16)
            pl.BlockSpec((1, NUM), const),                          # b1 (f32)
            pl.BlockSpec((NUM, NUM), const),                        # w2 (bf16)
            pl.BlockSpec((1, NUM), const),                          # b2 (f32)
            pl.BlockSpec((1, NUM), const),                          # w3 row (f32)
            pl.BlockSpec(memory_space=pltpu.MemorySpace.SMEM),      # b3 scalar
        ],
        out_specs=pl.BlockSpec((tm, 1), lambda i: (i, 0)),
        out_shape=jax.ShapeDtypeStruct((B, 1), jnp.float32),
        compiler_params=pltpu.CompilerParams(
            dimension_semantics=("parallel",),
            vmem_limit_bytes=48 * 1024 * 1024),
        cost_estimate=cost,
    )(state, w1, b1, w2, b2, w3, b3)

    return out


def init_params(key, state_dim):
    """Deterministic init mimicking nn.Linear default (uniform +/- 1/sqrt(fan_in)).
    Layouts (all pre-transposed to (in, out) for plain MXU dots):
      w1 (state_dim, NUM) bf16, b1 (1, NUM) f32,
      w2 (NUM, NUM)       bf16, b2 (1, NUM) f32,
      w3 (1, NUM) f32 row (VPU path), b3 (1, 1) f32 (SMEM scalar)."""
    keys = jax.random.split(key, 6)

    def linear(kw, kb, fan_in, fan_out):
        bound = 1.0 / jnp.sqrt(jnp.float32(fan_in))
        w = jax.random.uniform(kw, (fan_out, fan_in), jnp.float32, -bound, bound)
        b = jax.random.uniform(kb, (fan_out,), jnp.float32, -bound, bound)
        return w, b

    w1, b1 = linear(keys[0], keys[1], state_dim, NUM)   # (NUM, S), (NUM,)
    w2, b2 = linear(keys[2], keys[3], NUM, NUM)         # (NUM, NUM), (NUM,)
    w3, b3 = linear(keys[4], keys[5], NUM, 1)           # (1, NUM), (1,)

    return (jnp.transpose(w1).astype(jnp.bfloat16), b1.reshape(1, NUM),
            jnp.transpose(w2).astype(jnp.bfloat16), b2.reshape(1, NUM),
            w3.astype(jnp.float32),                      # (1, NUM) row
            b3.reshape(1, 1))


def reference_forward(state, params):
    """Pure-JAX reference with the same numerics (bf16 matmul inputs, f32 acc)."""
    w1, b1, w2, b2, w3, b3 = params
    xb = state.astype(jnp.bfloat16)
    h1 = jnp.maximum(
        jnp.dot(xb, w1, preferred_element_type=jnp.float32) + b1, 0.0)
    h2 = jnp.maximum(
        jnp.dot(h1.astype(jnp.bfloat16), w2,
                preferred_element_type=jnp.float32) + b2, 0.0)
    z = jnp.sum(h2 * w3, axis=-1, keepdims=True) + b3[0, 0]
    return _softplus(z)


if __name__ == "__main__":
    key = jax.random.PRNGKey(0)
    k_state, k_params, k_state2 = jax.random.split(key, 3)

    batch, state_dim = 8, 32
    state = jax.random.normal(k_state, (batch, state_dim), jnp.float32)
    params = init_params(k_params, state_dim)

    out = multipler_net_forward(state, params)
    out = jax.block_until_ready(out)
    ref = reference_forward(state, params)
    assert out.shape == (batch, 1)
    assert jnp.allclose(out, ref, atol=1e-3, rtol=1e-3)

    # Exercise the multi-step grid + ragged trailing block path.
    batch2 = 300
    state2 = jax.random.normal(k_state2, (batch2, state_dim), jnp.float32)
    out2 = jax.block_until_ready(
        multipler_net_forward(state2, params, batch_tile=128))
    ref2 = reference_forward(state2, params)
    assert out2.shape == (batch2, 1)
    assert jnp.allclose(out2, ref2, atol=1e-3, rtol=1e-3)

    print("KERNEL_OK")
</pallas_src>

<mosaic_0001>
module attributes {stable_mosaic.version = 11 : i64} {
  func.func @multipler_net_kernel(%arg0: i32, %arg1: memref<8x32xf32, #tpu.memory_space<vmem>>, %arg2: memref<32x256xbf16, #tpu.memory_space<vmem>>, %arg3: memref<1x256xf32, #tpu.memory_space<vmem>>, %arg4: memref<256x256xbf16, #tpu.memory_space<vmem>>, %arg5: memref<1x256xf32, #tpu.memory_space<vmem>>, %arg6: memref<1x256xf32, #tpu.memory_space<vmem>>, %arg7: memref<1x1xf32, #tpu.memory_space<smem>>, %arg8: memref<8x1xf32, #tpu.memory_space<vmem>>) attributes {dimension_semantics = [#tpu.dimension_semantics<parallel>], iteration_bounds = array<i64: 1>, scalar_prefetch = 0 : i64, scratch_operands = 0 : i64, tpu.core_type = #tpu.core_type<tc>, window_params = [{transform_indices = @transform_0, window_bounds = array<i64: 8, 32>}, {pipeline_mode = #tpu.pipeline_mode<synchronous>, transform_indices = @transform_1, window_bounds = array<i64: 32, 256>}, {pipeline_mode = #tpu.pipeline_mode<synchronous>, transform_indices = @transform_2, window_bounds = array<i64: 1, 256>}, {pipeline_mode = #tpu.pipeline_mode<synchronous>, transform_indices = @transform_3, window_bounds = array<i64: 256, 256>}, {pipeline_mode = #tpu.pipeline_mode<synchronous>, transform_indices = @transform_4, window_bounds = array<i64: 1, 256>}, {pipeline_mode = #tpu.pipeline_mode<synchronous>, transform_indices = @transform_5, window_bounds = array<i64: 1, 256>}, {transform_indices = @transform_6, window_bounds = array<i64: 1, 1>}, {transform_indices = @transform_7, window_bounds = array<i64: 8, 1>}]} {
    %c0 = arith.constant 0 : index
    %c0_0 = arith.constant 0 : index
    %0 = vector.load %arg1[%c0, %c0_0] : memref<8x32xf32, #tpu.memory_space<vmem>>, vector<8x32xf32>
    %1 = arith.truncf %0 : vector<8x32xf32> to vector<8x32xbf16>
    %c0_1 = arith.constant 0 : index
    %c0_2 = arith.constant 0 : index
    %2 = vector.load %arg2[%c0_1, %c0_2] : memref<32x256xbf16, #tpu.memory_space<vmem>>, vector<32x256xbf16>
    %cst = arith.constant dense<0.000000e+00> : vector<8x256xf32>
    %3 = tpu.matmul %1, %2, %cst {dimension_numbers = #tpu.dot_dimension_numbers<[1], [0], [0], [1], [0, 0, 1, 1], [], []>} : vector<8x32xbf16>, vector<32x256xbf16>, vector<8x256xf32> -> vector<8x256xf32>
    %c0_3 = arith.constant 0 : index
    %c0_4 = arith.constant 0 : index
    %4 = vector.load %arg3[%c0_3, %c0_4] : memref<1x256xf32, #tpu.memory_space<vmem>>, vector<1x256xf32>
    %5 = vector.broadcast %4 : vector<1x256xf32> to vector<8x256xf32>
    %6 = arith.addf %3, %5 : vector<8x256xf32>
    %cst_5 = arith.constant 0.000000e+00 : f32
    %7 = vector.broadcast %cst_5 : f32 to vector<8x256xf32>
    %8 = arith.maximumf %6, %7 : vector<8x256xf32>
    %9 = arith.truncf %8 : vector<8x256xf32> to vector<8x256xbf16>
    %c0_6 = arith.constant 0 : index
    %c0_7 = arith.constant 0 : index
    %10 = vector.load %arg4[%c0_6, %c0_7] : memref<256x256xbf16, #tpu.memory_space<vmem>>, vector<256x256xbf16>
    %cst_8 = arith.constant dense<0.000000e+00> : vector<8x256xf32>
    %11 = tpu.matmul %9, %10, %cst_8 {dimension_numbers = #tpu.dot_dimension_numbers<[1], [0], [0], [1], [0, 0, 1, 1], [], []>} : vector<8x256xbf16>, vector<256x256xbf16>, vector<8x256xf32> -> vector<8x256xf32>
    %c0_9 = arith.constant 0 : index
    %c0_10 = arith.constant 0 : index
    %12 = vector.load %arg5[%c0_9, %c0_10] : memref<1x256xf32, #tpu.memory_space<vmem>>, vector<1x256xf32>
    %13 = vector.broadcast %12 : vector<1x256xf32> to vector<8x256xf32>
    %14 = arith.addf %11, %13 : vector<8x256xf32>
    %cst_11 = arith.constant 0.000000e+00 : f32
    %15 = vector.broadcast %cst_11 : f32 to vector<8x256xf32>
    %16 = arith.maximumf %14, %15 : vector<8x256xf32>
    %c0_12 = arith.constant 0 : index
    %c0_13 = arith.constant 0 : index
    %17 = vector.load %arg6[%c0_12, %c0_13] : memref<1x256xf32, #tpu.memory_space<vmem>>, vector<1x256xf32>
    %18 = vector.broadcast %17 : vector<1x256xf32> to vector<8x256xf32>
    %19 = arith.mulf %16, %18 : vector<8x256xf32>
    %cst_14 = arith.constant dense<0.000000e+00> : vector<8xf32>
    %20 = vector.multi_reduction <add>, %19, %cst_14 [1] : vector<8x256xf32> to vector<8xf32>
    %21 = vector.shape_cast %20 : vector<8xf32> to vector<8x1xf32>
    %c0_15 = arith.constant 0 : index
    %c0_16 = arith.constant 0 : index
    %22 = memref.load %arg7[%c0_15, %c0_16] : memref<1x1xf32, #tpu.memory_space<smem>>
    %23 = vector.broadcast %22 : f32 to vector<8x1xf32>
    %24 = arith.addf %21, %23 : vector<8x1xf32>
    %cst_17 = arith.constant 2.000000e+01 : f32
    %25 = vector.broadcast %cst_17 : f32 to vector<8x1xf32>
    %26 = arith.cmpf ogt, %24, %25 : vector<8x1xf32>
    %cst_18 = arith.constant 2.000000e+01 : f32
    %27 = vector.broadcast %cst_18 : f32 to vector<8x1xf32>
    %28 = arith.minimumf %24, %27 : vector<8x1xf32>
    %29 = math.exp %28 : vector<8x1xf32>
    %30 = math.log1p %29 : vector<8x1xf32>
    %31 = arith.select %26, %24, %30 : vector<8x1xi1>, vector<8x1xf32>
    %c0_19 = arith.constant 0 : index
    %c0_20 = arith.constant 0 : index
    %32 = vector.load %arg8[%c0_19, %c0_20] : memref<8x1xf32, #tpu.memory_space<vmem>>, vector<8x1xf32>
    tpu.vector_store %arg8[%c0_19, %c0_20], %31 {strides = array<i32>} : memref<8x1xf32, #tpu.memory_space<vmem>>, vector<8x1xf32>,
    return
  }
  func.func @transform_0(%arg0: i32) -> (i32, i32) {
    %c0_i32 = arith.constant 0 : i32
    %c0_i32_0 = arith.constant 0 : i32
    return %arg0, %c0_i32 : i32, i32
  }
  func.func @transform_1(%arg0: i32) -> (i32, i32) {
    %c0_i32 = arith.constant 0 : i32
    %c0_i32_0 = arith.constant 0 : i32
    %c0_i32_1 = arith.constant 0 : i32
    return %c0_i32, %c0_i32_0 : i32, i32
  }
  func.func @transform_2(%arg0: i32) -> (i32, i32) {
    %c0_i32 = arith.constant 0 : i32
    %c0_i32_0 = arith.constant 0 : i32
    %c0_i32_1 = arith.constant 0 : i32
    return %c0_i32, %c0_i32_0 : i32, i32
  }
  func.func @transform_3(%arg0: i32) -> (i32, i32) {
    %c0_i32 = arith.constant 0 : i32
    %c0_i32_0 = arith.constant 0 : i32
    %c0_i32_1 = arith.constant 0 : i32
    return %c0_i32, %c0_i32_0 : i32, i32
  }
  func.func @transform_4(%arg0: i32) -> (i32, i32) {
    %c0_i32 = arith.constant 0 : i32
    %c0_i32_0 = arith.constant 0 : i32
    %c0_i32_1 = arith.constant 0 : i32
    return %c0_i32, %c0_i32_0 : i32, i32
  }
  func.func @transform_5(%arg0: i32) -> (i32, i32) {
    %c0_i32 = arith.constant 0 : i32
    %c0_i32_0 = arith.constant 0 : i32
    %c0_i32_1 = arith.constant 0 : i32
    return %c0_i32, %c0_i32_0 : i32, i32
  }
  func.func @transform_6(%arg0: i32) -> (i32, i32) {
    %c0_i32 = arith.constant 0 : i32
    %c0_i32_0 = arith.constant 0 : i32
    %c0_i32_1 = arith.constant 0 : i32
    return %c0_i32, %c0_i32_0 : i32, i32
  }
  func.func @transform_7(%arg0: i32) -> (i32, i32) {
    %c0_i32 = arith.constant 0 : i32
    %c0_i32_0 = arith.constant 0 : i32
    return %arg0, %c0_i32 : i32, i32
  }
}

</mosaic_0001>

<bundles_post_ra>
// kernel: tpu_custom_call.1
= control target key start
LH: loop header
LB: loop body
LE: loop exit
PB: predicated region body
PF: predicated region fallthrough
CT: control target
= control target key end

     0   :  { %13 = vsyncpa [#allocation4], 0  ;;  %s678_s0 = inlined_call_operand.hbm [shape: f32[8,32], index: 0, kind: input, shape index: {}]   ;;  %s679_s1 = inlined_call_operand.hbm [shape: bf16[32,256], index: 1, kind: input, shape index: {}]   ;;  %s680_s2 = inlined_call_operand.vmem [shape: f32[1,256], index: 2, kind: input, shape index: {}]   ;;  %s681_s3 = inlined_call_operand.hbm [shape: bf16[256,256], index: 3, kind: input, shape index: {}]   ;;  %s682_s4 = inlined_call_operand.vmem [shape: f32[1,256], index: 4, kind: input, shape index: {}]   ;;  %s683_s5 = inlined_call_operand.vmem [shape: f32[1,256], index: 5, kind: input, shape index: {}]   ;;  %s684_s6 = inlined_call_operand.<no memory space> [shape: f32[1,1], index: 6, kind: input, shape index: {}]   ;;  %s685_s7 = inlined_call_operand.vmem [shape: f32[8,1], index: 7, kind: output, shape index: {}]  }
   0x1   :  { %14 = vsyncpa [#allocation6], 0  ;;  %s608_s24 = smov [#allocation5]  }
   0x2   :  { %s30_s25 = sshll.u32 %s608_s24, 4  ;;  %s31_s25 = int_to_ptr.vmem [resolvable:$true] %s30_s25 }
   0x3   :  { %s552_s26 = scalar_lea.vmem %s31_s25, 512  ;;  %p557_p1 = scmp.lt.s32.totalorder %s31_s25, %s31_s25 }
   0x4   :  { %p553_p0 = scmp.ne.s32.totalorder %s31_s25, %s552_s26  ;;  %p558_p2 = scmp.lt.s32.totalorder %s552_s26, %s552_s26 }
   0x6   :  { %p559_p3 = por %p558_p2, %p557_p1 }
   0x8   :  { %p560_p4 = pnand %p559_p3, %p553_p0 }
   0xa   :  { %563 = shalt.err (!%p560_p4)
}
   0xb   :  { %s609_s27 = smov 128   ;;  %s610_s28 = smov 8  }
   0xc   :  { %36 = dma.hbm_to_vmem [thread:$0]  %s679_s1, 512, %s31_s25, [#allocation6], %s609_s27, %s609_s27, %s610_s28  }
   0xd   :  { %s611_s8 = smov [#allocation3]   ;;  %s612_s10 = smov [#allocation7]  }
   0xe   :  { %s21_s9 = sshll.u32 %s611_s8, 4  ;;  %s44_s11 = sshll.u32 %s612_s10, 4  ;;  %s22_s9 = int_to_ptr.vmem [resolvable:$true] %s21_s9  ;;  %s45_s11 = int_to_ptr.vmem [resolvable:$true] %s44_s11 }
   0xf   :  { %s572_s12 = scalar_lea.vmem %s22_s9, 128  ;;  %p577_p6 = scmp.lt.s32.totalorder %s22_s9, %s22_s9 }
  0x10   :  { %p573_p5 = scmp.ne.s32.totalorder %s22_s9, %s572_s12  ;;  %p578_p7 = scmp.lt.s32.totalorder %s572_s12, %s572_s12 }
  0x12   :  { %p579_p8 = por %p578_p7, %p577_p6 }
  0x14   :  { %p580_p9 = pnand %p579_p8, %p573_p5 }
  0x16   :  { %583 = shalt.err (!%p580_p9)
}
  0x17   :  { %24 = dma.hbm_to_vmem [thread:$0]  %s678_s0, 128, %s22_s9, [#allocation4]  }
  0x18   :  { %s592_s15 = scalar_lea.vmem %s45_s11, 4096  ;;  %p597_p11 = scmp.lt.s32.totalorder %s45_s11, %s45_s11 }
  0x19   :  { %p593_p10 = scmp.ne.s32.totalorder %s45_s11, %s592_s15  ;;  %p598_p12 = scmp.lt.s32.totalorder %s592_s15, %s592_s15 }
  0x1b   :  { %p599_p13 = por %p598_p12, %p597_p11 }
  0x1d   :  { %p600_p0 = pnand %p599_p13, %p593_p10 }
  0x1f   :  { %603 = shalt.err (!%p600_p0)
}
  0x20   :  { %50 = dma.hbm_to_vmem [thread:$0]  %s681_s3, 4096, %s45_s11, [#allocation6], %s609_s27, %s609_s27, %s610_s28  }
  0x21   :  { %604 = dma.done.wait [#allocation4], 128  }
  0x22   :  { %605 = vsyncadd [#allocation4], 4294967168 }
  0x23   :  { %606 = dma.done.wait [#allocation6], 4608  }
  0x24   :  { %607 = vsyncadd [#allocation6], 4294962688  ;;  %v613_v0 = vmov 0   ;;  %v486_v1 = vld [vmem:[#allocation5 + $0x14] ss:$8 sps:$4 sm:$0xff]   ;;  %vm105_vm0 = vcmask 261120   ;;  %v75_v39 = vlaneseq }
  0x25   :  { %141 = vmatprep.mubr.bf16.mxu0 %v613_v0  ;;  %v488_v2 = vld [vmem:[#allocation5 + $0x10] ss:$8 sps:$4 sm:$0xff]   ;;  %121 = vmatprep.subr.bf16.mxu0 %v486_v1  ;;  %v489_v3 = vld [vmem:[#allocation5 + $0x4] ss:$8 sps:$4 sm:$0xff]   ;;  %v491_v4 = vld [vmem:[#allocation5] ss:$8 sps:$4 sm:$0xff]  }
  0x26   :  { %v67_v5 = vld [vmem:[#allocation3] sm:$0xff]  ;;  %122 = vmatpush1.bf16.msra.mxu0 %v488_v2  ;;  %v495_v8 = vld [vmem:[#allocation7 + $0x64] ss:$8 sps:$4 sm:$0xff]   ;;  %v497_v10 = vld [vmem:[#allocation7 + $0x60] ss:$8 sps:$4 sm:$0xff]   ;;  %v76_v40 = vshrl.u32 %v75_v39, 7 }
  0x27   :  { %v492_v6 = vld [vmem:[#allocation7 + $0x74] ss:$8 sps:$4 sm:$0xff]   ;;  %123 = vmatprep.subr.bf16.mxu0 %v489_v3  ;;  %v494_v7 = vld [vmem:[#allocation7 + $0x70] ss:$8 sps:$4 sm:$0xff]   ;;  %v68_v9 = vpack.c.bf16 %v67_v5, %v67_v5  ;;  %v501_v13 = vld [vmem:[#allocation7 + $0x44] ss:$8 sps:$4 sm:$0xff]  }
  0x28   :  { %358 = vmatprep.subr.bf16.mxu1 %v492_v6  ;;  %v498_v11 = vld [vmem:[#allocation7 + $0x54] ss:$8 sps:$4 sm:$0xff]   ;;  %v500_v12 = vld [vmem:[#allocation7 + $0x50] ss:$8 sps:$4 sm:$0xff]   ;;  %v503_v14 = vld [vmem:[#allocation7 + $0x40] ss:$8 sps:$4 sm:$0xff]  }
  0x29   :  { %359 = vmatpush1.bf16.msra.mxu1 %v494_v7  ;;  %v504_v15 = vld [vmem:[#allocation7 + $0x34] ss:$8 sps:$4 sm:$0xff]   ;;  %v506_v16 = vld [vmem:[#allocation7 + $0x30] ss:$8 sps:$4 sm:$0xff]   ;;  %v507_v17 = vld [vmem:[#allocation7 + $0x24] ss:$8 sps:$4 sm:$0xff]  }
  0x2a   :  { %124 = vmatpush1.bf16.msra.mxu0 %v491_v4  ;;  %360 = vmatprep.subr.bf16.mxu1 %v495_v8  ;;  %v509_v18 = vld [vmem:[#allocation7 + $0x20] ss:$8 sps:$4 sm:$0xff]   ;;  %v510_v19 = vld [vmem:[#allocation7 + $0x14] ss:$8 sps:$4 sm:$0xff]   ;;  %v512_v20 = vld [vmem:[#allocation7 + $0x10] ss:$8 sps:$4 sm:$0xff]  }
  0x2b   :  { %v513_v21 = vld [vmem:[#allocation7 + $0x4] ss:$8 sps:$4 sm:$0xff]   ;;  %v515_v22 = vld [vmem:[#allocation7] ss:$8 sps:$4 sm:$0xff]   ;;  %v516_v23 = vld [vmem:[#allocation7 + $0xf4] ss:$8 sps:$4 sm:$0xff]  }
  0x2c   :  { %v518_v24 = vld [vmem:[#allocation7 + $0xf0] ss:$8 sps:$4 sm:$0xff]   ;;  %v519_v25 = vld [vmem:[#allocation7 + $0xe4] ss:$8 sps:$4 sm:$0xff]   ;;  %v521_v26 = vld [vmem:[#allocation7 + $0xe0] ss:$8 sps:$4 sm:$0xff]  }
  0x2d   :  { %447 = vmatmul.mubr.msk.bf16.vlgmr.msra.gmra.mxu0 %vm105_vm0, %v68_v9  ;;  %361 = vmatpush1.bf16.msra.mxu1 %v497_v10  ;;  %v522_v27 = vld [vmem:[#allocation7 + $0xd4] ss:$8 sps:$4 sm:$0xff]   ;;  %v524_v28 = vld [vmem:[#allocation7 + $0xd0] ss:$8 sps:$4 sm:$0xff]   ;;  %v525_v29 = vld [vmem:[#allocation7 + $0xc4] ss:$8 sps:$4 sm:$0xff]   ;;  %v419_v9 = vstv %s684_s6 }
  0x2e   :  { %362 = vmatprep.subr.bf16.mxu1 %v498_v11  ;;  %v527_v30 = vld [vmem:[#allocation7 + $0xc0] ss:$8 sps:$4 sm:$0xff]   ;;  %v528_v31 = vld [vmem:[#allocation7 + $0xb4] ss:$8 sps:$4 sm:$0xff]   ;;  %v530_v32 = vld [vmem:[#allocation7 + $0xb0] ss:$8 sps:$4 sm:$0xff]  }
  0x2f   :  { %v531_v33 = vld [vmem:[#allocation7 + $0xa4] ss:$8 sps:$4 sm:$0xff]   ;;  %v533_v34 = vld [vmem:[#allocation7 + $0xa0] ss:$8 sps:$4 sm:$0xff]   ;;  %v534_v35 = vld [vmem:[#allocation7 + $0x94] ss:$8 sps:$4 sm:$0xff]  }
  0x30   :  { %v536_v36 = vld [vmem:[#allocation7 + $0x90] ss:$8 sps:$4 sm:$0xff]   ;;  %v537_v37 = vld [vmem:[#allocation7 + $0x84] ss:$8 sps:$4 sm:$0xff]   ;;  %v539_v38 = vld [vmem:[#allocation7 + $0x80] ss:$8 sps:$4 sm:$0xff]  }
  0x31   :  { %363 = vmatpush1.bf16.msra.mxu1 %v500_v12  ;;  %v77_v41 = vsub.s32 0, %v76_v40  ;;  %v73_v42 = vld [vmem:[%s680_s2] sm:$0x3]  ;;  %v81_v43 = vsub.s32 1, %v76_v40  ;;  %vm435_vm2 = vcmask 7168  }
  0x32   :  { %364 = vmatprep.subr.bf16.mxu1 %v501_v13  ;;  %v186_v56 = vld [vmem:[%s682_s4] sm:$0x3] }
  0x33   :  { %v78_v44 = vrot.slane %v73_v42, %v77_v41  ;;  %v82_v45 = vrot.slane %v73_v42, %v81_v43  ;;  %v191_v57 = vrot.slane %v186_v56, %v77_v41  ;;  %v195_v58 = vrot.slane %v186_v56, %v81_v43  ;;  %v401_v60 = vld [vmem:[%s683_s5] sm:$0x3] }
  0x34   :  { %v406_v1 = vrot.slane %v401_v60, %v77_v41  ;;  %v410_v2 = vrot.slane %v401_v60, %v81_v43 }
  0x35   :  { %365 = vmatpush1.bf16.msra.mxu1 %v503_v14 }
  0x36   :  { %366 = vmatprep.subr.bf16.mxu1 %v504_v15 }
  0x39   :  { %367 = vmatpush1.bf16.msra.mxu1 %v506_v16 }
  0x3a   :  { %368 = vmatprep.subr.bf16.mxu1 %v507_v17 }
  0x3d   :  { %369 = vmatpush1.bf16.msra.mxu1 %v509_v18 }
  0x3e   :  { %370 = vmatprep.subr.bf16.mxu1 %v510_v19 }
  0x41   :  { %371 = vmatpush1.bf16.msra.mxu1 %v512_v20 }
  0x42   :  { %372 = vmatprep.subr.bf16.mxu1 %v513_v21 }
  0x45   :  { %373 = vmatpush1.bf16.msra.mxu1 %v515_v22 }
  0x46   :  { %374 = vmatprep.subr.bf16.mxu1 %v516_v23 }
  0x49   :  { %375 = vmatpush2.bf16.msra.mxu1 %v518_v24 }
  0x4a   :  { %376 = vmatprep.subr.bf16.mxu1 %v519_v25 }
  0x4d   :  { %377 = vmatpush2.bf16.msra.mxu1 %v521_v26 }
  0x4e   :  { %378 = vmatprep.subr.bf16.mxu1 %v522_v27 }
  0x51   :  { %379 = vmatpush2.bf16.msra.mxu1 %v524_v28 }
  0x52   :  { %380 = vmatprep.subr.bf16.mxu1 %v525_v29 }
  0x55   :  { %381 = vmatpush2.bf16.msra.mxu1 %v527_v30 }
  0x56   :  { %382 = vmatprep.subr.bf16.mxu1 %v528_v31 }
  0x59   :  { %383 = vmatpush2.bf16.msra.mxu1 %v530_v32 }
  0x5a   :  { %384 = vmatprep.subr.bf16.mxu1 %v531_v33 }
  0x5d   :  { %385 = vmatpush2.bf16.msra.mxu1 %v533_v34 }
  0x5e   :  { %386 = vmatprep.subr.bf16.mxu1 %v534_v35 }
  0x61   :  { %387 = vmatpush2.bf16.msra.mxu1 %v536_v36 }
  0x62   :  { %388 = vmatprep.subr.bf16.mxu1 %v537_v37 }
  0x65   :  { %389 = vmatpush2.bf16.msra.mxu1 %v539_v38 }
  0xed   :  { %v143_v46 = vpop.f32.mrf.mxu0 }
  0xee   :  { %v144_v47 = vadd.f32 %v143_v46, %v78_v44 }
  0xef   :  { %v145_v48 = vpop.f32.mrf.mxu0 }
  0xf0   :  { %v146_v49 = vadd.f32 %v145_v48, %v82_v45  ;;  %v150_v50 = vmax.f32 %v144_v47, 0.0 }
  0xf1   :  { %v147_v51 = vpop.f32.mrf.mxu0 }
  0xf2   :  { %v151_v52 = vmax.f32 %v146_v49, 0.0  ;;  %v152_v55 = vpack.c.bf16 %v150_v50, %v150_v50 }
  0xf3   :  { %v148_v53 = vpop.f32.mrf.mxu0 }
  0xf4   :  { %v153_v54 = vpack.c.bf16 %v151_v52, %v151_v52 }
  0xf6   :  { %390 = vmatprep.mubr.bf16.mxu1 %v153_v54 }
  0xf7   :  { %391 = vmatmul.mubr.bf16.vlgmr.msra.gmra.mxu1 %v152_v55 }
 0x1b7   :  { %v392_v59 = vpop.f32.mrf.mxu1 }
 0x1b8   :  { %v393_v61 = vadd.f32 %v392_v59, %v191_v57 }
 0x1b9   :  { %v394_v62 = vpop.f32.mrf.mxu1 }
 0x1ba   :  { %v399_v63 = vmax.f32 %v393_v61, 0.0  ;;  %v395_v0 = vadd.f32 %v394_v62, %v195_v58 }
 0x1bb   :  { %v396_v3 = vpop.f32.mrf.mxu1 }
 0x1bc   :  { %v400_v4 = vmax.f32 %v395_v0, 0.0  ;;  %v413_v6 = vmul.f32 %v406_v1, %v399_v63 }
 0x1bd   :  { %v397_v5 = vpop.f32.mrf.mxu1 }
 0x1be   :  { %v414_v7 = vmul.f32 %v410_v2, %v400_v4 }
 0x1c0   :  { %v415_v8 = vadd.f32 %v414_v7, %v413_v6 }
 0x1c2   :  { %416 = vadd.xlane.f32.xlu0 %v415_v8 }
 0x24b   :  { %v417_v10 = vpop.xlane.xlu0 %416 }
 0x24c   :  { %v420_v11 = vadd.f32 %v419_v9, %v417_v10 }
 0x24e   :  { %v422_v12 = vmin.f32 %v420_v11, 20.0  ;;  %vm421_vm3 = vcmp.gt.f32.partialorder %v420_v11, 20.0 }
 0x250   :  { %v423_v13 = vmul.f32 1.442695, %v422_v12 }
 0x252   :  { %540 = vpow2.f32 %v423_v13 }
 0x25f   :  { %v541_v14 = vpop.eup %540 }
 0x260   :  { %v425_v15 = vadd.f32 1.0, %v541_v14  ;;  %v428_v16 = vmul.f32 -0.5, %v541_v14  ;;  %v431_v18 = vand.u32 2147483647, %v541_v14 }
 0x262   :  { %542 = vlog2.f32 %v425_v15  ;;  %v429_v17 = vadd.f32 1.0, %v428_v16  ;;  %vm432_vm1 = vcmp.lt.f32.partialorder %v431_v18, 0.0004427343 }
 0x264   :  { %v430_v21 = vmul.f32 %v541_v14, %v429_v17 }
 0x26f   :  { %v543_v19 = vpop.eup %542 }
 0x270   :  { %v427_v20 = vmul.f32 0.6931472, %v543_v19 }
 0x272   :  { %v433_v22 = vsel %vm432_vm1, %v430_v21, %v427_v20 }
 0x273   :  { %v434_v23 = vsel %vm421_vm3, %v420_v11, %v433_v22 }
 0x274   :  { %436 = vst.msk [vmem:[%s685_s7] sm:$0xff] %vm435_vm2, %v434_v23 }
 0x275   :  { %441 = vsyncpa [#allocation4], 1 }
 0x276   :  { %442 = vsyncpa [#allocation6], 1 }

</bundles_post_ra>
